<compile_context>
chip_gen: v7x
topology: tpu7x:2x2x1
jax: 0.10.0
libtpu: 0.0.40
codegen_flags: <defaults>
</compile_context>

<pallas_src>
import functools

import numpy as np
import jax
import jax.numpy as jnp
from jax.experimental import pallas as pl
from jax.experimental.pallas import tpu as pltpu


def _round_up(x, m):
    return ((x + m - 1) // m) * m


def _choose_nb(N, Hs):
    """Images per grid step: grow the matmul M, keep >=2 grid steps (v7x TCs)."""
    if N <= 1:
        return max(N, 1)
    cap_rows = max(1, 256 // Hs)   # target M ~<= 256 rows per step
    cap_steps = N // 2             # keep >= 2 grid steps so 'parallel' can shard
    best = 1
    for nb in range(1, N + 1):
        if N % nb == 0 and nb <= cap_rows and nb <= cap_steps:
            best = nb
    return best


def _fold_conv_weights(w_oihw, w_in, w_out, zero_in_cols=()):
    """Torch-layout (Cout, Cin, 3, 3) weights -> banded matrices for the
    width-folded conv.

    B[kh, wi*Cin + ci, wo*Cout + co] = w[co, ci, kh, kw]  where wi == wo + kw,
    so   out[h, wo*Cout+co] = sum_kh  x_folded[h+kh, :] @ B[kh]
    reproduces the 3x3 cross-correlation exactly.  Width positions listed in
    `zero_in_cols` are treated as zero padding (their weight rows stay zero),
    which bakes the conv2 width-halo zeroing into the weights.
    Shape: (3, w_in*Cin, w_out*Cout), float32 numpy array.
    """
    w = np.asarray(w_oihw)
    cout, cin, kh_sz, kw_sz = w.shape
    w_khwio = np.transpose(w, (2, 3, 1, 0))            # (3, 3, Cin, Cout)
    b = np.zeros((kh_sz, w_in * cin, w_out * cout), np.float32)
    zero_in_cols = set(zero_in_cols)
    for kh in range(kh_sz):
        for wo in range(w_out):
            for kw in range(kw_sz):
                wi = wo + kw
                if wi < w_in and wi not in zero_in_cols:
                    b[kh, wi * cin:(wi + 1) * cin,
                      wo * cout:(wo + 1) * cout] = w_khwio[kh, kw]
    return b


def _double_conv_kernel(x_ref, w1_ref, b1_ref, w2_ref, b2_ref, o_ref, y1_ref,
                        *, nb, hs, h):
    """Fused (conv3x3 pad=1 + ReLU) x2 for a block of `nb` row-stacked images.

    x_ref : (nb*hs, (W+4)*Cin)   zero-padded, width-folded input rows
    w1_ref: (3, (W+4)*Cin, (W+2)*C1)  banded conv1 weights (one slab per kh)
    b1_ref: (1, (W+2)*C1)             conv1 bias tiled across width
    w2_ref: (3, (W+2)*C1, W*C1)       banded conv2 weights (width halo pre-zeroed)
    b2_ref: (1, W*C1)                 conv2 bias tiled across width
    o_ref : (nb, H, W*C1)             lane-dense output
    y1_ref: (nb*hs-2, (W+2)*C1)       VMEM scratch holding the conv1 activation
    """
    r1 = y1_ref.shape[0]        # nb*hs - 2 : conv1 rows (halo + inter-image junk)
    r2 = r1 - 2                 # nb*hs - 4 : conv2 rows
    wc1 = y1_ref.shape[1]       # (W+2)*C1

    # ---- conv1 + bias + ReLU: 3 row-shifted MXU matmuls straight off the ref ----
    acc1 = jnp.dot(x_ref[0:r1, :], w1_ref[0], preferred_element_type=jnp.float32)
    acc1 = acc1 + jnp.dot(x_ref[1:r1 + 1, :], w1_ref[1],
                          preferred_element_type=jnp.float32)
    acc1 = acc1 + jnp.dot(x_ref[2:r1 + 2, :], w1_ref[2],
                          preferred_element_type=jnp.float32)
    y1_ref[...] = jnp.maximum(acc1 + b1_ref[...], 0.0)

    # ---- conv2's zero padding: zero the two row-halo rows of each image -------
    # (the width-halo columns are already killed via zero rows baked into w2_ref)
    zrow = jnp.zeros((1, wc1), jnp.float32)
    for b in range(nb):
        y1_ref[b * hs:b * hs + 1, :] = zrow               # halo row r = 0
        y1_ref[b * hs + h + 1:b * hs + h + 2, :] = zrow   # halo row r = H+1

    # ---- conv2 + bias + ReLU: 3 row-shifted matmuls off the VMEM scratch ------
    acc2 = jnp.dot(y1_ref[0:r2, :], w2_ref[0], preferred_element_type=jnp.float32)
    acc2 = acc2 + jnp.dot(y1_ref[1:r2 + 1, :], w2_ref[1],
                          preferred_element_type=jnp.float32)
    acc2 = acc2 + jnp.dot(y1_ref[2:r2 + 2, :], w2_ref[2],
                          preferred_element_type=jnp.float32)
    y2 = jnp.maximum(acc2 + b2_ref[...], 0.0)

    # ---- scatter each image's H valid rows to the lane-dense output -----------
    for b in range(nb):
        o_ref[b] = y2[b * hs:b * hs + h, :].astype(o_ref.dtype)


def _double_conv_pallas(xf, w1b, bt1, w2b, bt2, *, N, nb, Hs, H, W, c1):
    """Run the fused kernel.  xf: (N*Hs, (W+4)*Cin) row-stacked padded input."""
    steps = N // nb
    wcin = xf.shape[1]
    wc1h = w1b.shape[2]
    wco = W * c1
    r1 = nb * Hs - 2
    kernel = functools.partial(_double_conv_kernel, nb=nb, hs=Hs, h=H)
    return pl.pallas_call(
        kernel,
        out_shape=jax.ShapeDtypeStruct((N, H, wco), jnp.float32),
        grid=(steps,),
        in_specs=[
            pl.BlockSpec((nb * Hs, wcin), lambda n: (n, 0)),
            pl.BlockSpec(w1b.shape, lambda n: (0, 0, 0)),
            pl.BlockSpec(bt1.shape, lambda n: (0, 0)),
            pl.BlockSpec(w2b.shape, lambda n: (0, 0, 0)),
            pl.BlockSpec(bt2.shape, lambda n: (0, 0)),
        ],
        out_specs=pl.BlockSpec((nb, H, wco), lambda n: (n, 0, 0)),
        scratch_shapes=[pltpu.VMEM((r1, wc1h), jnp.float32)],
        compiler_params=pltpu.CompilerParams(
            dimension_semantics=("parallel",)),   # batch shards across TCs (v7x)
    )(xf, w1b, bt1, w2b, bt2)


class DoubleConvPallas:
    """JAX/Pallas equivalent of the PyTorch DoubleConv module (NCHW API)."""

    def __init__(self, in_channels, out_channels, key):
        k1, k2, k3, k4 = jax.random.split(key, 4)
        # PyTorch Conv2d default init (kaiming-uniform bound), stored as OIHW.
        bound1 = 1.0 / float(np.sqrt(in_channels * 9))
        self.w1 = jax.random.uniform(k1, (out_channels, in_channels, 3, 3),
                                     jnp.float32, -bound1, bound1)
        self.b1 = jax.random.uniform(k2, (out_channels,), jnp.float32,
                                     -bound1, bound1)
        bound2 = 1.0 / float(np.sqrt(out_channels * 9))
        self.w2 = jax.random.uniform(k3, (out_channels, out_channels, 3, 3),
                                     jnp.float32, -bound2, bound2)
        self.b2 = jax.random.uniform(k4, (out_channels,), jnp.float32,
                                     -bound2, bound2)
        self.in_channels = in_channels
        self.out_channels = out_channels
        # Banded-weight cache, keyed on W only.  NOTE: weights are treated as
        # frozen after __init__; call invalidate_packed() if they are replaced.
        self._packed = {}

    def invalidate_packed(self):
        self._packed = {}

    def _get_packed(self, W):
        if W not in self._packed:
            c1 = self.out_channels
            w1b = _fold_conv_weights(self.w1, W + 4, W + 2)
            # conv2: width positions wi=0 and wi=W+1 of the conv1 activation are
            # zero padding -> bake the zeroing into the banded weights.
            w2b = _fold_conv_weights(self.w2, W + 2, W, zero_in_cols=(0, W + 1))
            bt1 = jnp.tile(self.b1, W + 2).reshape(1, (W + 2) * c1)
            bt2 = jnp.tile(self.b2, W).reshape(1, W * c1)
            self._packed[W] = (jnp.asarray(w1b), bt1, jnp.asarray(w2b), bt2)
        return self._packed[W]

    def __call__(self, x_nchw):
        N, Cin, H, W = x_nchw.shape
        c1 = self.out_channels
        Hs = _round_up(H + 4, 8)                 # per-image row stride (tile aligned)
        nb = _choose_nb(N, Hs)                   # images per grid step
        w1b, bt1, w2b, bt2 = self._get_packed(W)  # hoisted weight prep (one-time)

        # Single fused layout op on the way in: NCHW -> NHWC, pad 2px (conv1+conv2
        # padding) + extra bottom rows up to Hs, then a free contiguous reshape
        # folding width*channels into lanes and stacking images along rows.
        x = jnp.transpose(x_nchw, (0, 2, 3, 1))                       # (N,H,W,Cin)
        x = jnp.pad(x, ((0, 0), (2, Hs - H - 2), (2, 2), (0, 0)))     # (N,Hs,W+4,Cin)
        xf = x.reshape(N * Hs, (W + 4) * Cin)                         # row-stacked

        y = _double_conv_pallas(xf, w1b, bt1, w2b, bt2,
                                N=N, nb=nb, Hs=Hs, H=H, W=W, c1=c1)   # (N,H,W*c1)

        # Single layout op on the way out: free reshape + NHWC -> NCHW transpose.
        y = y.reshape(N, H, W, c1)
        return jnp.transpose(y, (0, 3, 1, 2))


def _reference_double_conv(x_nchw, mod: DoubleConvPallas):
    """Pure-JAX reference (lax.conv) for a sanity check."""
    dn = jax.lax.conv_dimension_numbers(x_nchw.shape, mod.w1.shape,
                                        ("NCHW", "OIHW", "NCHW"))
    y = jax.lax.conv_general_dilated(x_nchw, mod.w1, (1, 1), "SAME",
                                     dimension_numbers=dn)
    y = jnp.maximum(y + mod.b1[None, :, None, None], 0.0)
    y = jax.lax.conv_general_dilated(y, mod.w2, (1, 1), "SAME",
                                     dimension_numbers=dn)
    y = jnp.maximum(y + mod.b2[None, :, None, None], 0.0)
    return y


if __name__ == "__main__":
    key = jax.random.PRNGKey(0)
    k_x, k_p = jax.random.split(key)

    N, Cin, H, W = 2, 4, 16, 16
    Cout = 8
    x = jax.random.normal(k_x, (N, Cin, H, W), jnp.float32)  # NCHW, like PyTorch

    module = DoubleConvPallas(Cin, Cout, k_p)

    fwd = jax.jit(module.__call__)
    out = jax.block_until_ready(fwd(x))

    ref = _reference_double_conv(x, module)
    assert out.shape == (N, Cout, H, W)
    assert jnp.allclose(out, ref, atol=1e-4, rtol=1e-4), "mismatch vs reference"

    print("KERNEL_OK")
</pallas_src>

<mosaic_0001>
module attributes {stable_mosaic.version = 11 : i64} {
  func.func @_double_conv_kernel(%arg0: i32, %arg1: memref<24x80xf32, #tpu.memory_space<vmem>>, %arg2: memref<3x80x144xf32, #tpu.memory_space<vmem>>, %arg3: memref<1x144xf32, #tpu.memory_space<vmem>>, %arg4: memref<3x144x128xf32, #tpu.memory_space<vmem>>, %arg5: memref<1x128xf32, #tpu.memory_space<vmem>>, %arg6: memref<1x16x128xf32, #tpu.memory_space<vmem>>, %arg7: memref<22x144xf32, #tpu.memory_space<vmem>>) attributes {dimension_semantics = [#tpu.dimension_semantics<parallel>], iteration_bounds = array<i64: 2>, scalar_prefetch = 0 : i64, scratch_operands = 1 : i64, tpu.core_type = #tpu.core_type<tc>, window_params = [{transform_indices = @transform_0, window_bounds = array<i64: 24, 80>}, {pipeline_mode = #tpu.pipeline_mode<synchronous>, transform_indices = @transform_1, window_bounds = array<i64: 3, 80, 144>}, {pipeline_mode = #tpu.pipeline_mode<synchronous>, transform_indices = @transform_2, window_bounds = array<i64: 1, 144>}, {pipeline_mode = #tpu.pipeline_mode<synchronous>, transform_indices = @transform_3, window_bounds = array<i64: 3, 144, 128>}, {pipeline_mode = #tpu.pipeline_mode<synchronous>, transform_indices = @transform_4, window_bounds = array<i64: 1, 128>}, {transform_indices = @transform_5, window_bounds = array<i64: 1, 16, 128>}]} {
    %c0 = arith.constant 0 : index
    %c0_0 = arith.constant 0 : index
    %0 = vector.load %arg1[%c0, %c0_0] : memref<24x80xf32, #tpu.memory_space<vmem>>, vector<22x80xf32>
    %c0_1 = arith.constant 0 : index
    %c0_2 = arith.constant 0 : index
    %c0_3 = arith.constant 0 : index
    %1 = vector.load %arg2[%c0_1, %c0_2, %c0_3] : memref<3x80x144xf32, #tpu.memory_space<vmem>>, vector<1x80x144xf32>
    %2 = vector.shape_cast %1 : vector<1x80x144xf32> to vector<80x144xf32>
    %cst = arith.constant dense<0.000000e+00> : vector<22x144xf32>
    %3 = tpu.matmul %0, %2, %cst {dimension_numbers = #tpu.dot_dimension_numbers<[1], [0], [0], [1], [0, 0, 1, 1], [], []>} : vector<22x80xf32>, vector<80x144xf32>, vector<22x144xf32> -> vector<22x144xf32>
    %c1 = arith.constant 1 : index
    %c0_4 = arith.constant 0 : index
    %4 = vector.load %arg1[%c1, %c0_4] : memref<24x80xf32, #tpu.memory_space<vmem>>, vector<22x80xf32>
    %c1_5 = arith.constant 1 : index
    %c0_6 = arith.constant 0 : index
    %c0_7 = arith.constant 0 : index
    %5 = vector.load %arg2[%c1_5, %c0_6, %c0_7] : memref<3x80x144xf32, #tpu.memory_space<vmem>>, vector<1x80x144xf32>
    %6 = vector.shape_cast %5 : vector<1x80x144xf32> to vector<80x144xf32>
    %cst_8 = arith.constant dense<0.000000e+00> : vector<22x144xf32>
    %7 = tpu.matmul %4, %6, %cst_8 {dimension_numbers = #tpu.dot_dimension_numbers<[1], [0], [0], [1], [0, 0, 1, 1], [], []>} : vector<22x80xf32>, vector<80x144xf32>, vector<22x144xf32> -> vector<22x144xf32>
    %8 = arith.addf %3, %7 : vector<22x144xf32>
    %c2 = arith.constant 2 : index
    %c0_9 = arith.constant 0 : index
    %9 = vector.load %arg1[%c2, %c0_9] : memref<24x80xf32, #tpu.memory_space<vmem>>, vector<22x80xf32>
    %c2_10 = arith.constant 2 : index
    %c0_11 = arith.constant 0 : index
    %c0_12 = arith.constant 0 : index
    %10 = vector.load %arg2[%c2_10, %c0_11, %c0_12] : memref<3x80x144xf32, #tpu.memory_space<vmem>>, vector<1x80x144xf32>
    %11 = vector.shape_cast %10 : vector<1x80x144xf32> to vector<80x144xf32>
    %cst_13 = arith.constant dense<0.000000e+00> : vector<22x144xf32>
    %12 = tpu.matmul %9, %11, %cst_13 {dimension_numbers = #tpu.dot_dimension_numbers<[1], [0], [0], [1], [0, 0, 1, 1], [], []>} : vector<22x80xf32>, vector<80x144xf32>, vector<22x144xf32> -> vector<22x144xf32>
    %13 = arith.addf %8, %12 : vector<22x144xf32>
    %c0_14 = arith.constant 0 : index
    %c0_15 = arith.constant 0 : index
    %14 = vector.load %arg3[%c0_14, %c0_15] : memref<1x144xf32, #tpu.memory_space<vmem>>, vector<1x144xf32>
    %15 = vector.broadcast %14 : vector<1x144xf32> to vector<22x144xf32>
    %16 = arith.addf %13, %15 : vector<22x144xf32>
    %cst_16 = arith.constant 0.000000e+00 : f32
    %17 = vector.broadcast %cst_16 : f32 to vector<22x144xf32>
    %18 = arith.maximumf %16, %17 : vector<22x144xf32>
    %c0_17 = arith.constant 0 : index
    %c0_18 = arith.constant 0 : index
    %19 = vector.load %arg7[%c0_17, %c0_18] : memref<22x144xf32, #tpu.memory_space<vmem>>, vector<22x144xf32>
    tpu.vector_store %arg7[%c0_17, %c0_18], %18 {strides = array<i32>} : memref<22x144xf32, #tpu.memory_space<vmem>>, vector<22x144xf32>,
    %cst_19 = arith.constant 0.000000e+00 : f32
    %20 = vector.broadcast %cst_19 : f32 to vector<1x144xf32>
    %c0_20 = arith.constant 0 : index
    %c0_21 = arith.constant 0 : index
    %21 = vector.load %arg7[%c0_20, %c0_21] : memref<22x144xf32, #tpu.memory_space<vmem>>, vector<1x144xf32>
    tpu.vector_store %arg7[%c0_20, %c0_21], %20 {strides = array<i32>} : memref<22x144xf32, #tpu.memory_space<vmem>>, vector<1x144xf32>,
    %c17 = arith.constant 17 : index
    %c0_22 = arith.constant 0 : index
    %22 = vector.load %arg7[%c17, %c0_22] : memref<22x144xf32, #tpu.memory_space<vmem>>, vector<1x144xf32>
    tpu.vector_store %arg7[%c17, %c0_22], %20 {strides = array<i32>} : memref<22x144xf32, #tpu.memory_space<vmem>>, vector<1x144xf32>,
    %c0_23 = arith.constant 0 : index
    %c0_24 = arith.constant 0 : index
    %23 = vector.load %arg7[%c0_23, %c0_24] : memref<22x144xf32, #tpu.memory_space<vmem>>, vector<20x144xf32>
    %c0_25 = arith.constant 0 : index
    %c0_26 = arith.constant 0 : index
    %c0_27 = arith.constant 0 : index
    %24 = vector.load %arg4[%c0_25, %c0_26, %c0_27] : memref<3x144x128xf32, #tpu.memory_space<vmem>>, vector<1x144x128xf32>
    %25 = vector.shape_cast %24 : vector<1x144x128xf32> to vector<144x128xf32>
    %cst_28 = arith.constant dense<0.000000e+00> : vector<20x128xf32>
    %26 = tpu.matmul %23, %25, %cst_28 {dimension_numbers = #tpu.dot_dimension_numbers<[1], [0], [0], [1], [0, 0, 1, 1], [], []>} : vector<20x144xf32>, vector<144x128xf32>, vector<20x128xf32> -> vector<20x128xf32>
    %c1_29 = arith.constant 1 : index
    %c0_30 = arith.constant 0 : index
    %27 = vector.load %arg7[%c1_29, %c0_30] : memref<22x144xf32, #tpu.memory_space<vmem>>, vector<20x144xf32>
    %c1_31 = arith.constant 1 : index
    %c0_32 = arith.constant 0 : index
    %c0_33 = arith.constant 0 : index
    %28 = vector.load %arg4[%c1_31, %c0_32, %c0_33] : memref<3x144x128xf32, #tpu.memory_space<vmem>>, vector<1x144x128xf32>
    %29 = vector.shape_cast %28 : vector<1x144x128xf32> to vector<144x128xf32>
    %cst_34 = arith.constant dense<0.000000e+00> : vector<20x128xf32>
    %30 = tpu.matmul %27, %29, %cst_34 {dimension_numbers = #tpu.dot_dimension_numbers<[1], [0], [0], [1], [0, 0, 1, 1], [], []>} : vector<20x144xf32>, vector<144x128xf32>, vector<20x128xf32> -> vector<20x128xf32>
    %31 = arith.addf %26, %30 : vector<20x128xf32>
    %c2_35 = arith.constant 2 : index
    %c0_36 = arith.constant 0 : index
    %32 = vector.load %arg7[%c2_35, %c0_36] : memref<22x144xf32, #tpu.memory_space<vmem>>, vector<20x144xf32>
    %c2_37 = arith.constant 2 : index
    %c0_38 = arith.constant 0 : index
    %c0_39 = arith.constant 0 : index
    %33 = vector.load %arg4[%c2_37, %c0_38, %c0_39] : memref<3x144x128xf32, #tpu.memory_space<vmem>>, vector<1x144x128xf32>
    %34 = vector.shape_cast %33 : vector<1x144x128xf32> to vector<144x128xf32>
    %cst_40 = arith.constant dense<0.000000e+00> : vector<20x128xf32>
    %35 = tpu.matmul %32, %34, %cst_40 {dimension_numbers = #tpu.dot_dimension_numbers<[1], [0], [0], [1], [0, 0, 1, 1], [], []>} : vector<20x144xf32>, vector<144x128xf32>, vector<20x128xf32> -> vector<20x128xf32>
    %36 = arith.addf %31, %35 : vector<20x128xf32>
    %c0_41 = arith.constant 0 : index
    %c0_42 = arith.constant 0 : index
    %37 = vector.load %arg5[%c0_41, %c0_42] : memref<1x128xf32, #tpu.memory_space<vmem>>, vector<1x128xf32>
    %38 = vector.broadcast %37 : vector<1x128xf32> to vector<20x128xf32>
    %39 = arith.addf %36, %38 : vector<20x128xf32>
    %cst_43 = arith.constant 0.000000e+00 : f32
    %40 = vector.broadcast %cst_43 : f32 to vector<20x128xf32>
    %41 = arith.maximumf %39, %40 : vector<20x128xf32>
    %42 = vector.extract_strided_slice %41 {offsets = [0, 0], sizes = [16, 128], strides = [1, 1]} : vector<20x128xf32> to vector<16x128xf32>
    %c0_44 = arith.constant 0 : index
    %c0_45 = arith.constant 0 : index
    %c0_46 = arith.constant 0 : index
    %43 = vector.load %arg6[%c0_44, %c0_45, %c0_46] : memref<1x16x128xf32, #tpu.memory_space<vmem>>, vector<1x16x128xf32>
    %44 = vector.shape_cast %43 : vector<1x16x128xf32> to vector<16x128xf32>
    %45 = vector.shape_cast %42 : vector<16x128xf32> to vector<1x16x128xf32>
    tpu.vector_store %arg6[%c0_44, %c0_45, %c0_46], %45 {strides = array<i32>} : memref<1x16x128xf32, #tpu.memory_space<vmem>>, vector<1x16x128xf32>,
    return
  }
  func.func @transform_0(%arg0: i32) -> (i32, i32) {
    %c0_i32 = arith.constant 0 : i32
    %c0_i32_0 = arith.constant 0 : i32
    return %arg0, %c0_i32 : i32, i32
  }
  func.func @transform_1(%arg0: i32) -> (i32, i32, i32) {
    %c0_i32 = arith.constant 0 : i32
    %c0_i32_0 = arith.constant 0 : i32
    %c0_i32_1 = arith.constant 0 : i32
    %c0_i32_2 = arith.constant 0 : i32
    return %c0_i32, %c0_i32_0, %c0_i32_1 : i32, i32, i32
  }
  func.func @transform_2(%arg0: i32) -> (i32, i32) {
    %c0_i32 = arith.constant 0 : i32
    %c0_i32_0 = arith.constant 0 : i32
    %c0_i32_1 = arith.constant 0 : i32
    return %c0_i32, %c0_i32_0 : i32, i32
  }
  func.func @transform_3(%arg0: i32) -> (i32, i32, i32) {
    %c0_i32 = arith.constant 0 : i32
    %c0_i32_0 = arith.constant 0 : i32
    %c0_i32_1 = arith.constant 0 : i32
    %c0_i32_2 = arith.constant 0 : i32
    return %c0_i32, %c0_i32_0, %c0_i32_1 : i32, i32, i32
  }
  func.func @transform_4(%arg0: i32) -> (i32, i32) {
    %c0_i32 = arith.constant 0 : i32
    %c0_i32_0 = arith.constant 0 : i32
    %c0_i32_1 = arith.constant 0 : i32
    return %c0_i32, %c0_i32_0 : i32, i32
  }
  func.func @transform_5(%arg0: i32) -> (i32, i32, i32) {
    %c0_i32 = arith.constant 0 : i32
    %c0_i32_0 = arith.constant 0 : i32
    %c0_i32_1 = arith.constant 0 : i32
    return %arg0, %c0_i32, %c0_i32_0 : i32, i32, i32
  }
}

</mosaic_0001>

<bundles_post_ra>
// kernel: tile.10
= control target key start
LH: loop header
LB: loop body
LE: loop exit
PB: predicated region body
PF: predicated region fallthrough
CT: control target
= control target key end

     0   :  { %s34_s0 = inlined_call_operand.vmem [shape: f32[8], index: 0, kind: input, shape index: {}]   ;;  %s35_s1 = inlined_call_operand.vmem [shape: f32[18,8], index: 1, kind: output, shape index: {}]  }
   0x1   :  { %v4_v0 = vld [vmem:[%s34_s0] ss:$0 sm:$0xff] }
   0x2   :  { %5 = vst [vmem:[%s35_s1] sm:$0xff] %v4_v0  ;;  %10 = vst [vmem:[%s35_s1 + $0x8] sm:$0xff] %v4_v0 }
   0x3   :  { %11 = vst [vmem:[%s35_s1 + $0x10] sm:$0xff] %v4_v0 }

// kernel: tile.14
= control target key start
LH: loop header
LB: loop body
LE: loop exit
PB: predicated region body
PF: predicated region fallthrough
CT: control target
= control target key end

     0   :  { %s28_s0 = inlined_call_operand.vmem [shape: f32[8], index: 0, kind: input, shape index: {}]   ;;  %s29_s1 = inlined_call_operand.vmem [shape: f32[16,8], index: 1, kind: output, shape index: {}]  }
   0x1   :  { %v4_v0 = vld [vmem:[%s28_s0] ss:$0 sm:$0xff] }
   0x2   :  { %5 = vst [vmem:[%s29_s1] sm:$0xff] %v4_v0  ;;  %8 = vst [vmem:[%s29_s1 + $0x8] sm:$0xff] %v4_v0 }

// kernel: tile.11
= control target key start
LH: loop header
LB: loop body
LE: loop exit
PB: predicated region body
PF: predicated region fallthrough
CT: control target
= control target key end

     0   :  { %s139_s10 = smov 120   ;;  %s140_s11 = smov 104   ;;  %vm4_vm0 = vcmask 64512   ;;  %vm10_vm1 = vcmask 1048512   ;;  %vm16_vm2 = vcmask 982912   ;;  %vm22_vm3 = vcmask 917312   ;;  %s218_s0 = inlined_call_operand.vmem [shape: f32[18,8], index: 0, kind: input, shape index: {}]   ;;  %s219_s1 = inlined_call_operand.vmem [shape: f32[1,144], index: 1, kind: output, shape index: {}]  }
   0x1   :  { %v108_v0 = vld [vmem:[%s218_s0 + $0xf] sm:$0x1]   ;;  %v110_v1 = vld [vmem:[%s218_s0 + $0xd] sm:$0x1]   ;;  %v109_v2 = vld [vmem:[%s218_s0 + $0xe] sm:$0x1]  }
   0x2   :  { %8 = vrot.lane.b32.xlu0 %v108_v0, %s139_s10  ;;  %20 = vrot.lane.b32.xlu1 %v110_v1, %s140_s11  ;;  %v111_v3 = vld [vmem:[%s218_s0 + $0xc] sm:$0x1]   ;;  %s141_s16 = smov 112   ;;  %s142_s17 = smov 96   ;;  %v112_v4 = vld [vmem:[%s218_s0 + $0xb] sm:$0x1]  }
   0x3   :  { %v113_v5 = vld [vmem:[%s218_s0 + $0xa] sm:$0x1]   ;;  %s2_s22 = smov 3  ;;  %s143_s23 = smov 88   ;;  %v114_v7 = vld [vmem:[%s218_s0 + $0x9] sm:$0x1]  }
   0x4   :  { %s144_s24 = smov 80   ;;  %v3_v6 = vld [vmem:[%s218_s0] ss:$16 sm:%s2_s22]   ;;  %v115_v8 = vld [vmem:[%s218_s0 + $0x8] sm:$0x1]   ;;  %s145_s2 = smov 72  }
   0x5   :  { %5 = vst.msk [vmem:[#allocation0] ss:$8 sm:$0x3] %vm4_vm0, %v3_v6   ;;  %s146_s3 = smov 64   ;;  %v116_v9 = vld [vmem:[%s218_s0 + $0x7] sm:$0x1]  }
   0x6   :  { %14 = vrot.lane.b32.xlu0 %v109_v2, %s141_s16  ;;  %26 = vrot.lane.b32.xlu1 %v111_v3, %s142_s17  ;;  %v117_v10 = vld [vmem:[%s218_s0 + $0x6] sm:$0x1]   ;;  %s147_s8 = smov 56   ;;  %s148_s9 = smov 48   ;;  %v118_v11 = vld [vmem:[%s218_s0 + $0x5] sm:$0x1]  }
   0x7   :  { %v119_v12 = vld [vmem:[%s218_s0 + $0x4] sm:$0x1]   ;;  %s149_s14 = smov 40   ;;  %s150_s15 = smov 32   ;;  %v120_v13 = vld [vmem:[%s218_s0 + $0x3] sm:$0x1]  }
   0x8   :  { %v121_v14 = vld [vmem:[%s218_s0 + $0x2] sm:$0x1]   ;;  %s91_s20 = smov 3  ;;  %s151_s21 = smov 24   ;;  %vm28_vm4 = vcmask 851712   ;;  %vm34_vm5 = vcmask 786112  }
   0x9   :  { %s152_s22 = smov 16   ;;  %v122_v15 = vld [vmem:[%s218_s0 + $0x1] ss:$16 sm:%s91_s20]   ;;  %s153_s0 = smov 8   ;;  %vm40_vm6 = vcmask 720512   ;;  %vm46_vm7 = vcmask 654912  }
   0xa   :  { %32 = vrot.lane.b32.xlu0 %v112_v4, %s143_s23  ;;  %38 = vrot.lane.b32.xlu1 %v113_v5, %s144_s24  ;;  %vm52_vm8 = vcmask 589312   ;;  %vm58_vm9 = vcmask 523712   ;;  %vm64_vm10 = vcmask 458112   ;;  %vm70_vm11 = vcmask 392512  }
   0xb   :  { %vm76_vm12 = vcmask 326912   ;;  %vm82_vm13 = vcmask 261312   ;;  %vm88_vm14 = vcmask 195712   ;;  %vm95_vm15 = vcmask 130112  }
   0xe   :  { %44 = vrot.lane.b32.xlu0 %v114_v7, %s145_s2  ;;  %50 = vrot.lane.b32.xlu1 %v115_v8, %s146_s3 }
  0x12   :  { %56 = vrot.lane.b32.xlu0 %v116_v9, %s147_s8  ;;  %62 = vrot.lane.b32.xlu1 %v117_v10, %s148_s9 }
  0x16   :  { %68 = vrot.lane.b32.xlu0 %v118_v11, %s149_s14  ;;  %74 = vrot.lane.b32.xlu1 %v119_v12, %s150_s15 }
  0x1a   :  { %80 = vrot.lane.b32.xlu0 %v120_v13, %s151_s21  ;;  %86 = vrot.lane.b32.xlu1 %v121_v14, %s152_s22 }
  0x1e   :  { %93 = vrot.lane.b32.xlu0 %v122_v15, %s153_s0 }
  0x74   :  { %v9_v16 = vpop.permute.xlu0 %8   ;;  %v21_v17 = vpop.permute.xlu1 %20  }
  0x75   :  { %11 = vst.msk [vmem:[#allocation0] sm:$0x1] %vm10_vm1, %v9_v16  }
  0x78   :  { %v15_v18 = vpop.permute.xlu0 %14   ;;  %v27_v19 = vpop.permute.xlu1 %26  }
  0x79   :  { %17 = vst.msk [vmem:[#allocation0] sm:$0x1] %vm16_vm2, %v15_v18  }
  0x7a   :  { %23 = vst.msk [vmem:[#allocation0] sm:$0x1] %vm22_vm3, %v21_v17  }
  0x7b   :  { %29 = vst.msk [vmem:[#allocation0] sm:$0x1] %vm28_vm4, %v27_v19  }
  0x7c   :  { %v33_v20 = vpop.permute.xlu0 %32   ;;  %v39_v21 = vpop.permute.xlu1 %38  }
  0x7d   :  { %35 = vst.msk [vmem:[#allocation0] sm:$0x1] %vm34_vm5, %v33_v20  }
  0x7e   :  { %41 = vst.msk [vmem:[#allocation0] sm:$0x1] %vm40_vm6, %v39_v21  }
  0x80   :  { %v45_v22 = vpop.permute.xlu0 %44   ;;  %v51_v23 = vpop.permute.xlu1 %50  }
  0x81   :  { %47 = vst.msk [vmem:[#allocation0] sm:$0x1] %vm46_vm7, %v45_v22  }
  0x82   :  { %53 = vst.msk [vmem:[#allocation0] sm:$0x1] %vm52_vm8, %v51_v23  }
  0x84   :  { %v57_v24 = vpop.permute.xlu0 %56   ;;  %v63_v25 = vpop.permute.xlu1 %62  }
  0x85   :  { %59 = vst.msk [vmem:[#allocation0] sm:$0x1] %vm58_vm9, %v57_v24  }
  0x86   :  { %65 = vst.msk [vmem:[#allocation0] sm:$0x1] %vm64_vm10, %v63_v25  }
  0x88   :  { %v69_v26 = vpop.permute.xlu0 %68   ;;  %v75_v27 = vpop.permute.xlu1 %74  }
  0x89   :  { %71 = vst.msk [vmem:[#allocation0] sm:$0x1] %vm70_vm11, %v69_v26  }
  0x8a   :  { %77 = vst.msk [vmem:[#allocation0] sm:$0x1] %vm76_vm12, %v75_v27  }
  0x8c   :  { %v81_v28 = vpop.permute.xlu0 %80   ;;  %v87_v29 = vpop.permute.xlu1 %86  }
  0x8d   :  { %83 = vst.msk [vmem:[#allocation0] sm:$0x1] %vm82_vm13, %v81_v28  }
  0x8e   :  { %89 = vst.msk [vmem:[#allocation0] sm:$0x1] %vm88_vm14, %v87_v29  }
  0x90   :  { %v94_v30 = vpop.permute.xlu0 %93  }
  0x91   :  { %96 = vst.msk [vmem:[#allocation0] ss:$8 sm:$0x3] %vm95_vm15, %v94_v30  }
  0x98   :  { %v100_v31 = vld [vmem:[#allocation0] sm:$0x1]  ;;  %v104_v32 = vld [vmem:[#allocation0 + $0x8] sm:$0x1] }
  0x99   :  { %102 = vst [vmem:[%s219_s1] sm:$0x1] %v100_v31  ;;  %123 = vst [vmem:[%s219_s1 + $0x1] sm:$0x1] %v104_v32 }

// kernel: tile.15
= control target key start
LH: loop header
LB: loop body
LE: loop exit
PB: predicated region body
PF: predicated region fallthrough
CT: control target
= control target key end

     0   :  { %s131_s10 = smov 120   ;;  %s132_s11 = smov 104   ;;  %vm3_vm0 = vcmask 64512   ;;  %vm9_vm1 = vcmask 1048512   ;;  %vm15_vm2 = vcmask 982912   ;;  %vm21_vm3 = vcmask 917312   ;;  %s207_s0 = inlined_call_operand.vmem [shape: f32[16,8], index: 0, kind: input, shape index: {}]   ;;  %s208_s1 = inlined_call_operand.vmem [shape: f32[1,128], index: 1, kind: output, shape index: {}]  }
   0x1   :  { %v101_v0 = vld [vmem:[%s207_s0 + $0xf] sm:$0x1]   ;;  %v103_v1 = vld [vmem:[%s207_s0 + $0xd] sm:$0x1]   ;;  %v102_v2 = vld [vmem:[%s207_s0 + $0xe] sm:$0x1]  }
   0x2   :  { %7 = vrot.lane.b32.xlu0 %v101_v0, %s131_s10  ;;  %19 = vrot.lane.b32.xlu1 %v103_v1, %s132_s11  ;;  %v104_v3 = vld [vmem:[%s207_s0 + $0xc] sm:$0x1]   ;;  %s133_s16 = smov 112   ;;  %s134_s17 = smov 96   ;;  %v105_v4 = vld [vmem:[%s207_s0 + $0xb] sm:$0x1]  }
   0x3   :  { %v106_v5 = vld [vmem:[%s207_s0 + $0xa] sm:$0x1]   ;;  %v2_v6 = vld [vmem:[%s207_s0] sm:$0x1]   ;;  %s135_s24 = smov 88   ;;  %s136_s25 = smov 80  }
   0x4   :  { %4 = vst.msk [vmem:[#allocation0] sm:$0x1] %vm3_vm0, %v2_v6   ;;  %v107_v7 = vld [vmem:[%s207_s0 + $0x9] sm:$0x1]   ;;  %v108_v8 = vld [vmem:[%s207_s0 + $0x8] sm:$0x1]  }
   0x5   :  { %s137_s30 = smov 72   ;;  %s138_s2 = smov 64   ;;  %v109_v9 = vld [vmem:[%s207_s0 + $0x7] sm:$0x1]   ;;  %v110_v10 = vld [vmem:[%s207_s0 + $0x6] sm:$0x1]  }
   0x6   :  { %13 = vrot.lane.b32.xlu0 %v102_v2, %s133_s16  ;;  %25 = vrot.lane.b32.xlu1 %v104_v3, %s134_s17  ;;  %s139_s7 = smov 56   ;;  %s140_s8 = smov 48   ;;  %v111_v11 = vld [vmem:[%s207_s0 + $0x5] sm:$0x1]   ;;  %v112_v12 = vld [vmem:[%s207_s0 + $0x4] sm:$0x1]  }
   0x7   :  { %s141_s13 = smov 40   ;;  %s142_s14 = smov 32   ;;  %v113_v13 = vld [vmem:[%s207_s0 + $0x3] sm:$0x1]   ;;  %v114_v14 = vld [vmem:[%s207_s0 + $0x2] sm:$0x1]  }
   0x8   :  { %s143_s19 = smov 24   ;;  %s144_s20 = smov 16   ;;  %v115_v15 = vld [vmem:[%s207_s0 + $0x1] sm:$0x1]   ;;  %vm27_vm4 = vcmask 851712   ;;  %vm33_vm5 = vcmask 786112  }
   0x9   :  { %s145_s0 = smov 8   ;;  %vm39_vm6 = vcmask 720512   ;;  %vm45_vm7 = vcmask 654912   ;;  %vm51_vm8 = vcmask 589312   ;;  %vm57_vm9 = vcmask 523712  }
   0xa   :  { %31 = vrot.lane.b32.xlu0 %v105_v4, %s135_s24  ;;  %37 = vrot.lane.b32.xlu1 %v106_v5, %s136_s25  ;;  %vm63_vm10 = vcmask 458112   ;;  %vm69_vm11 = vcmask 392512   ;;  %vm75_vm12 = vcmask 326912   ;;  %vm81_vm13 = vcmask 261312  }
   0xb   :  { %vm87_vm14 = vcmask 195712   ;;  %vm93_vm15 = vcmask 130112  }
   0xe   :  { %43 = vrot.lane.b32.xlu0 %v107_v7, %s137_s30  ;;  %49 = vrot.lane.b32.xlu1 %v108_v8, %s138_s2 }
  0x12   :  { %55 = vrot.lane.b32.xlu0 %v109_v9, %s139_s7  ;;  %61 = vrot.lane.b32.xlu1 %v110_v10, %s140_s8 }
  0x16   :  { %67 = vrot.lane.b32.xlu0 %v111_v11, %s141_s13  ;;  %73 = vrot.lane.b32.xlu1 %v112_v12, %s142_s14 }
  0x1a   :  { %79 = vrot.lane.b32.xlu0 %v113_v13, %s143_s19  ;;  %85 = vrot.lane.b32.xlu1 %v114_v14, %s144_s20 }
  0x1e   :  { %91 = vrot.lane.b32.xlu0 %v115_v15, %s145_s0 }
  0x74   :  { %v8_v16 = vpop.permute.xlu0 %7   ;;  %v20_v17 = vpop.permute.xlu1 %19  }
  0x75   :  { %10 = vst.msk [vmem:[#allocation0] sm:$0x1] %vm9_vm1, %v8_v16  }
  0x78   :  { %v14_v18 = vpop.permute.xlu0 %13   ;;  %v26_v19 = vpop.permute.xlu1 %25  }
  0x79   :  { %16 = vst.msk [vmem:[#allocation0] sm:$0x1] %vm15_vm2, %v14_v18  }
  0x7a   :  { %22 = vst.msk [vmem:[#allocation0] sm:$0x1] %vm21_vm3, %v20_v17  }
  0x7b   :  { %28 = vst.msk [vmem:[#allocation0] sm:$0x1] %vm27_vm4, %v26_v19  }
  0x7c   :  { %v32_v20 = vpop.permute.xlu0 %31   ;;  %v38_v21 = vpop.permute.xlu1 %37  }
  0x7d   :  { %34 = vst.msk [vmem:[#allocation0] sm:$0x1] %vm33_vm5, %v32_v20  }
  0x7e   :  { %40 = vst.msk [vmem:[#allocation0] sm:$0x1] %vm39_vm6, %v38_v21  }
  0x80   :  { %v44_v22 = vpop.permute.xlu0 %43   ;;  %v50_v23 = vpop.permute.xlu1 %49  }
  0x81   :  { %46 = vst.msk [vmem:[#allocation0] sm:$0x1] %vm45_vm7, %v44_v22  }
  0x82   :  { %52 = vst.msk [vmem:[#allocation0] sm:$0x1] %vm51_vm8, %v50_v23  }
  0x84   :  { %v56_v24 = vpop.permute.xlu0 %55   ;;  %v62_v25 = vpop.permute.xlu1 %61  }
  0x85   :  { %58 = vst.msk [vmem:[#allocation0] sm:$0x1] %vm57_vm9, %v56_v24  }
  0x86   :  { %64 = vst.msk [vmem:[#allocation0] sm:$0x1] %vm63_vm10, %v62_v25  }
  0x88   :  { %v68_v26 = vpop.permute.xlu0 %67   ;;  %v74_v27 = vpop.permute.xlu1 %73  }
  0x89   :  { %70 = vst.msk [vmem:[#allocation0] sm:$0x1] %vm69_vm11, %v68_v26  }
  0x8a   :  { %76 = vst.msk [vmem:[#allocation0] sm:$0x1] %vm75_vm12, %v74_v27  }
  0x8c   :  { %v80_v28 = vpop.permute.xlu0 %79   ;;  %v86_v29 = vpop.permute.xlu1 %85  }
  0x8d   :  { %82 = vst.msk [vmem:[#allocation0] sm:$0x1] %vm81_vm13, %v80_v28  }
  0x8e   :  { %88 = vst.msk [vmem:[#allocation0] sm:$0x1] %vm87_vm14, %v86_v29  }
  0x90   :  { %v92_v30 = vpop.permute.xlu0 %91  }
  0x91   :  { %94 = vst.msk [vmem:[#allocation0] sm:$0x1] %vm93_vm15, %v92_v30  }
  0x98   :  { %v98_v31 = vld [vmem:[#allocation0] sm:$0x1] }
  0x99   :  { %100 = vst [vmem:[%s208_s1] sm:$0x1] %v98_v31 }

// kernel: a_call__.1
= control target key start
LH: loop header
LB: loop body
LE: loop exit
PB: predicated region body
PF: predicated region fallthrough
CT: control target
= control target key end

     0   :  { %s1366_s18 = smov 0   ;;  %s1840_s0 = inlined_call_operand.vmem [shape: f32[48,80], index: 0, kind: input, shape index: {}]   ;;  %s1841_s1 = inlined_call_operand.vmem [shape: f32[3,80,144], index: 1, kind: input, shape index: {}]   ;;  %s1842_s2 = inlined_call_operand.vmem [shape: f32[1,144], index: 2, kind: input, shape index: {}]   ;;  %s1843_s3 = inlined_call_operand.vmem [shape: f32[3,144,128], index: 3, kind: input, shape index: {}]   ;;  %s1844_s4 = inlined_call_operand.vmem [shape: f32[1,128], index: 4, kind: input, shape index: {}]   ;;  %s1845_s5 = inlined_call_operand.vmem [shape: f32[2,16,128], index: 5, kind: output, shape index: {}]  }
   0x1 LB: > { %s1372_s19 = sadd.s32 4294967295, %s1332_s18   ;;  %p1061_p0 = scmp.ge.s32.totalorder %s1332_s18, 1  ;;  %s1332_s18 = sphi %s1366_s18, %s15_s18  }
   0x2   : > { %p188_p1 = scmp.lt.s32.totalorder %s1332_s18, 3 }
   0x4   : > { %p189_p2 = pnand %p1061_p0, %p188_p1 }
   0x5   : > { %v231_v0 = vld [vmem:[%s1841_s1 + $0x8] sm:$0xff] (!%p189_p2)  ;;  %v233_v1 = vld [vmem:[%s1841_s1 + $0x18] sm:$0xff] (!%p189_p2)  ;;  %v230_v2 = vld [vmem:[%s1841_s1] sm:$0xff] (!%p189_p2)  ;;  %v1334_v7 = vmov (!%p189_p2), 0.0   ;;  %s216_s13 = smul.u32 (!%p189_p2), 3, %s1372_s19  ;;  %vm274_vm0 = vcmask (!%p189_p2), 654336  }
   0x6   : > { %192 = sbr.rel (%p189_p2) target bundleno = 544 (0x220), region = 40  ;;  %v1183_v3 = vpack.c.bf16 (!%p189_p2), %v233_v1, %v231_v0  ;;  %v232_v4 = vld [vmem:[%s1841_s1 + $0x10] sm:$0xff] (!%p189_p2)  ;;  %v235_v5 = vld [vmem:[%s1841_s1 + $0x28] sm:$0xff] (!%p189_p2)  ;;  %v237_v6 = vld [vmem:[%s1841_s1 + $0x38] sm:$0xff] (!%p189_p2)  ;;  %440 = vmatprep.mubr.f32.mxu0 (!%p189_p2), %v1334_v7  ;;  %348 = vmatprep.mubr.f32.mxu1 (!%p189_p2), %v1334_v7  ;;  %vm606_vm1 = vcmask (!%p189_p2), 130048   ;;  %vm611_vm3 = vcmask (!%p189_p2), 128000  }
   0x7   : > { %v1185_v8 = vpack.c.bf16 (!%p189_p2), %v232_v4, %v230_v2  ;;  %v1187_v9 = vpack.c.bf16 (!%p189_p2), %v237_v6, %v235_v5  ;;  %v234_v10 = vld [vmem:[%s1841_s1 + $0x20] sm:$0xff] (!%p189_p2)  ;;  %v236_v11 = vld [vmem:[%s1841_s1 + $0x30] sm:$0xff] (!%p189_p2)  ;;  %v239_v12 = vld [vmem:[%s1841_s1 + $0x48] sm:$0xff] (!%p189_p2)  ;;  %p1424_p3 = scmp.lt.s32.totalorder (!%p189_p2), %s216_s13, 5  ;;  %vm675_vm4 = vcmask (!%p189_p2), 1046528   ;;  %vm888_vm5 = vcmask (!%p189_p2), 1045504  }
   0x8   : > { %1184 = vmatprep.subr.bf16.mxu0 (!%p189_p2), %v1183_v3  ;;  %v241_v13 = vld [vmem:[%s1841_s1 + $0x58] sm:$0xff] (!%p189_p2)  ;;  %v1189_v14 = vpack.c.bf16 (!%p189_p2), %v236_v11, %v234_v10  ;;  %v238_v16 = vld [vmem:[%s1841_s1 + $0x40] sm:$0xff] (!%p189_p2)  ;;  %v240_v17 = vld [vmem:[%s1841_s1 + $0x50] sm:$0xff] (!%p189_p2)  ;;  %p222_p4 = scmp.lt.s32.totalorder (!%p189_p2), %s1372_s19, 1 }
   0x9   : > { %1186 = vmatpush1.bf16.msra.mxu0 (!%p189_p2), %v1185_v8  ;;  %v1191_v15 = vpack.c.bf16 (!%p189_p2), %v241_v13, %v239_v12  ;;  %v243_v18 = vld [vmem:[%s1841_s1 + $0x68] sm:$0xff] (!%p189_p2)  ;;  %v245_v19 = vld [vmem:[%s1841_s1 + $0x78] sm:$0xff] (!%p189_p2)  ;;  %v1065_v22 = vld [vmem:[%s1841_s1 + $0xa0] sm:$0xff] (!%p189_p2)  ;;  %v1193_v24 = vpack.c.bf16 (!%p189_p2), %v240_v17, %v238_v16 }
   0xa   : > { %1188 = vmatprep.subr.bf16.mxu0 (!%p189_p2), %v1187_v9  ;;  %v1066_v20 = vld [vmem:[%s1841_s1 + $0xa8] sm:$0xff] (!%p189_p2)  ;;  %v1068_v21 = vld [vmem:[%s1841_s1 + $0xb8] sm:$0xff] (!%p189_p2)  ;;  %v1067_v23 = vld [vmem:[%s1841_s1 + $0xb0] sm:$0xff] (!%p189_p2)  ;;  %v1195_v29 = vpack.c.bf16 (!%p189_p2), %v245_v19, %v243_v18 }
   0xb   : > { %v242_v25 = vld [vmem:[%s1841_s1 + $0x60] sm:$0xff] (!%p189_p2)  ;;  %v244_v26 = vld [vmem:[%s1841_s1 + $0x70] sm:$0xff] (!%p189_p2)  ;;  %v1163_v27 = vpack.c.bf16 (!%p189_p2), %v1068_v21, %v1066_v20  ;;  %v1165_v28 = vpack.c.bf16 (!%p189_p2), %v1067_v23, %v1065_v22  ;;  %v247_v30 = vld [vmem:[%s1841_s1 + $0x88] sm:$0xff] (!%p189_p2) }
   0xc   : > { %v249_v31 = vld [vmem:[%s1841_s1 + $0x98] sm:$0xff] (!%p189_p2)  ;;  %v1070_v32 = vld [vmem:[%s1841_s1 + $0xc8] sm:$0xff] (!%p189_p2)  ;;  %v1069_v34 = vld [vmem:[%s1841_s1 + $0xc0] sm:$0xff] (!%p189_p2)  ;;  %v1197_v38 = vpack.c.bf16 (!%p189_p2), %v244_v26, %v242_v25 }
   0xd   : > { %1190 = vmatpush1.bf16.msra.mxu0 %v1189_v14  ;;  %1164 = vmatprep.subr.bf16.mxu1 %v1163_v27  ;;  %s1850_s13 = smov (!%p1424_p3, %s216_s13), 5  ;;  %v1072_v33 = vld [vmem:[%s1841_s1 + $0xd8] sm:$0xff]  ;;  %v1071_v35 = vld [vmem:[%s1841_s1 + $0xd0] sm:$0xff]  ;;  %v246_v39 = vld [vmem:[%s1841_s1 + $0x80] sm:$0xff]  ;;  %v1199_v42 = vpack.c.bf16 %v249_v31, %v247_v30  ;;  %s1852_s19 = smov (!%p222_p4, %s1372_s19), 1 }
   0xe   : > { %1192 = vmatprep.subr.bf16.mxu0 %v1191_v15  ;;  %1166 = vmatpush1.bf16.msra.mxu1 %v1165_v28  ;;  %v1167_v36 = vpack.c.bf16 %v1072_v33, %v1070_v32  ;;  %v1169_v37 = vpack.c.bf16 %v1071_v35, %v1069_v34  ;;  %v1074_v40 = vld [vmem:[%s1841_s1 + $0xe8] sm:$0xff]  ;;  %v1076_v41 = vld [vmem:[%s1841_s1 + $0xf8] sm:$0xff]  ;;  %v248_v43 = vld [vmem:[%s1841_s1 + $0x90] sm:$0xff]  ;;  %s1062_s23 = sshll.u32 %s1850_s13, 3  ;;  %v1335_v28 = vmov 0.0|0.0   ;;  %s1162_s6 = sshll.u32 %s1852_s19, 4 }
   0xf   : > { %v1171_v44 = vpack.c.bf16 %v1076_v41, %v1074_v40  ;;  %v1073_v45 = vld [vmem:[%s1841_s1 + $0xe0] sm:$0xff]  ;;  %v1075_v46 = vld [vmem:[%s1841_s1 + $0xf0] sm:$0xff]  ;;  %v1092_v47 = vld [vmem:[%s1841_s1 + $0x148] sm:$0xff]  ;;  %v1201_v52 = vpack.c.bf16 %v248_v43, %v246_v39  ;;  %s1505_s8 = scalar_lea.vmem %s1840_s0, %s1062_s23  ;;  %s226_s10 = scalar_lea.vmem %s1845_s5, %s1162_s6 }
  0x10   : > { %1168 = vmatprep.subr.bf16.mxu1 %v1167_v36  ;;  %v1094_v48 = vld [vmem:[%s1841_s1 + $0x158] sm:$0xff]  ;;  %v1173_v49 = vpack.c.bf16 %v1075_v46, %v1073_v45  ;;  %v1078_v50 = vld [vmem:[%s1841_s1 + $0x108] sm:$0xff]  ;;  %v1077_v54 = vld [vmem:[%s1841_s1 + $0x100] sm:$0xff] }
  0x11   : > { %1194 = vmatpush1.bf16.msra.mxu0 %v1193_v24  ;;  %v1080_v51 = vld [vmem:[%s1841_s1 + $0x118] sm:$0xff]  ;;  %v1079_v55 = vld [vmem:[%s1841_s1 + $0x110] sm:$0xff]  ;;  %v1203_v56 = vpack.c.bf16 %v1094_v48, %v1092_v47  ;;  %v1091_v57 = vld [vmem:[%s1841_s1 + $0x140] sm:$0xff] }
  0x12   : > { %1196 = vmatprep.subr.bf16.mxu0 %v1195_v29  ;;  %1170 = vmatpush1.bf16.msra.mxu1 %v1169_v37  ;;  %v1175_v53 = vpack.c.bf16 %v1080_v51, %v1078_v50  ;;  %v1093_v58 = vld [vmem:[%s1841_s1 + $0x150] sm:$0xff]  ;;  %v1096_v59 = vld [vmem:[%s1841_s1 + $0x168] sm:$0xff]  ;;  %v1098_v60 = vld [vmem:[%s1841_s1 + $0x178] sm:$0xff]  ;;  %v1177_v63 = vpack.c.bf16 %v1079_v55, %v1077_v54 }
  0x13   : > { %1172 = vmatprep.subr.bf16.mxu1 %v1171_v44  ;;  %v1082_v61 = vld [vmem:[%s1841_s1 + $0x128] sm:$0xff]  ;;  %v1084_v62 = vld [vmem:[%s1841_s1 + $0x138] sm:$0xff]  ;;  %v227_v0 = vld [vmem:[%s1505_s8] sm:$0xff]  ;;  %v1205_v1 = vpack.c.bf16 %v1093_v58, %v1091_v57  ;;  %v1207_v4 = vpack.c.bf16 %v1098_v60, %v1096_v59 }
  0x14   : > { %v1081_v2 = vld [vmem:[%s1841_s1 + $0x120] sm:$0xff]  ;;  %v1083_v3 = vld [vmem:[%s1841_s1 + $0x130] sm:$0xff]  ;;  %v1179_v8 = vpack.c.bf16 %v1084_v62, %v1082_v61  ;;  %v1100_v9 = vld [vmem:[%s1841_s1 + $0x188] sm:$0xff] }
  0x15   : > { %1198 = vmatpush1.bf16.msra.mxu0 %v1197_v38  ;;  %v1095_v5 = vld [vmem:[%s1841_s1 + $0x160] sm:$0xff]  ;;  %v1097_v6 = vld [vmem:[%s1841_s1 + $0x170] sm:$0xff]  ;;  %v1102_v10 = vld [vmem:[%s1841_s1 + $0x198] sm:$0xff]  ;;  %v1181_v11 = vpack.c.bf16 %v1083_v3, %v1081_v2 }
  0x16   : > { %1200 = vmatprep.subr.bf16.mxu0 %v1199_v42  ;;  %1174 = vmatpush1.bf16.msra.mxu1 %v1173_v49  ;;  %v1209_v12 = vpack.c.bf16 %v1097_v6, %v1095_v5  ;;  %v228_v13 = vld [vmem:[%s1505_s8 + $0x8] sm:$0xff]  ;;  %v1211_v14 = vpack.c.bf16 %v1102_v10, %v1100_v9  ;;  %v1099_v15 = vld [vmem:[%s1841_s1 + $0x180] sm:$0xff]  ;;  %v1101_v16 = vld [vmem:[%s1841_s1 + $0x190] sm:$0xff] }
  0x17   : > { %1176 = vmatprep.subr.bf16.mxu1 %v1175_v53  ;;  %v1104_v17 = vld [vmem:[%s1841_s1 + $0x1a8] sm:$0xff]  ;;  %v1106_v18 = vld [vmem:[%s1841_s1 + $0x1b8] sm:$0xff]  ;;  %v1114_v19 = vld [vmem:[%s1843_s3 + $0x90] sm:$0xff]  ;;  %v1213_v22 = vpack.c.bf16 %v1101_v16, %v1099_v15 }
  0x18   : > { %v1115_v20 = vld [vmem:[%s1843_s3 + $0x98] sm:$0xff]  ;;  %v250_v21 = vld [vmem:[%s1505_s8 + $0x1] sm:$0xff]  ;;  %v229_v23 = vld [vmem:[%s1505_s8 + $0x10] sm:$0x3f]  ;;  %v1215_v24 = vpack.c.bf16 %v1106_v18, %v1104_v17 }
  0x19   : > { %1202 = vmatpush1.bf16.msra.mxu0 %v1201_v52  ;;  %v1103_v25 = vld [vmem:[%s1841_s1 + $0x1a0] sm:$0xff]  ;;  %v1105_v26 = vld [vmem:[%s1841_s1 + $0x1b0] sm:$0xff]  ;;  %v1108_v27 = vld [vmem:[%s1841_s1 + $0x1c8] sm:$0xff]  ;;  %v1224_v29 = vpack.c.bf16 %v1115_v20, %v1114_v19 }
  0x1a   : > { %1204 = vmatprep.subr.bf16.mxu0 %v1203_v56  ;;  %1178 = vmatpush1.bf16.msra.mxu1 %v1177_v63  ;;  %v1110_v30 = vld [vmem:[%s1841_s1 + $0x1d8] sm:$0xff]  ;;  %v1116_v31 = vld [vmem:[%s1843_s3 + $0xa0] sm:$0xff]  ;;  %v1117_v32 = vld [vmem:[%s1843_s3 + $0xa8] sm:$0xff]  ;;  %v1217_v34 = vpack.c.bf16 %v1105_v26, %v1103_v25 }
  0x1b   : > { %1180 = vmatprep.subr.bf16.mxu1 %v1179_v8  ;;  %v251_v33 = vld [vmem:[%s1505_s8 + $0x9] sm:$0xff]  ;;  %v1219_v35 = vpack.c.bf16 %v1110_v30, %v1108_v27  ;;  %v1107_v36 = vld [vmem:[%s1841_s1 + $0x1c0] sm:$0xff]  ;;  %v1227_v38 = vpack.c.bf16 %v1117_v32, %v1116_v31  ;;  %v1119_v40 = vld [vmem:[%s1843_s3 + $0xb8] sm:$0xff]  ;;  %v583_v31 = vlaneseq }
  0x1c   : > { %1088 = vmatmul.mubr.msk.f32.vlgmr.msra.gmra.mrb[0].mxu0 %vm274_vm0, %v227_v0  ;;  %v1109_v37 = vld [vmem:[%s1841_s1 + $0x1d0] sm:$0xff]  ;;  %v1138_v43 = vld [vmem:[%s1843_s3 + $0x120] sm:$0xff]  ;;  %v1139_v44 = vld [vmem:[%s1843_s3 + $0x128] sm:$0xff] }
  0x1d   : > { %1206 = vmatpush1.bf16.msra.mxu0 %v1205_v1  ;;  %446 = vmatprep.mubr.f32.mxu0 %v1334_v7  ;;  %v1118_v39 = vld [vmem:[%s1843_s3 + $0xb0] sm:$0xff]  ;;  %v1221_v42 = vpack.c.bf16 %v1109_v37, %v1107_v36  ;;  %v459_v46 = vld [vmem:[%s1505_s8 + $0x2] sm:$0xff]  ;;  %v1278_v47 = vpack.c.bf16 %v1139_v44, %v1138_v43  ;;  %v1141_v49 = vld [vmem:[%s1843_s3 + $0x138] sm:$0xff]  ;;  %vm1728_vm2 = vcmp.lt.s32.totalorder %v583_v31, 144 }
  0x1e   : > { %1208 = vmatprep.subr.bf16.mxu0 %v1207_v4  ;;  %1182 = vmatpush1.bf16.msra.mxu1 %v1181_v11  ;;  %v252_v41 = vld [vmem:[%s1505_s8 + $0x11] sm:$0x3f]  ;;  %v1230_v45 = vpack.c.bf16 %v1119_v40, %v1118_v39  ;;  %v1142_v52 = vld [vmem:[%s1843_s3 + $0x140] sm:$0xff]  ;;  %v1143_v53 = vld [vmem:[%s1843_s3 + $0x148] sm:$0xff] }
  0x1f   : > { %1223 = vmatprep.subr.bf16.mxu1 %v1335_v28  ;;  %v1140_v48 = vld [vmem:[%s1843_s3 + $0x130] sm:$0xff]  ;;  %v1284_v55 = vpack.c.bf16 %v1143_v53, %v1142_v52  ;;  %v1120_v56 = vld [vmem:[%s1843_s3 + $0xc0] sm:$0xff]  ;;  %v1121_v57 = vld [vmem:[%s1843_s3 + $0xc8] sm:$0xff] }
  0x20   : > { %1089 = vmatmul.mubr.msk.f32.gmra.mrb[2].mxu0 %vm274_vm0, %v228_v13  ;;  %v460_v50 = vld [vmem:[%s1505_s8 + $0xa] sm:$0xff]  ;;  %v1281_v51 = vpack.c.bf16 %v1141_v49, %v1140_v48  ;;  %v461_v54 = vld [vmem:[%s1505_s8 + $0x12] sm:$0x3f]  ;;  %v1233_v58 = vpack.c.bf16 %v1121_v57, %v1120_v56  ;;  %v1145_v60 = vld [vmem:[%s1843_s3 + $0x158] sm:$0xff] }
  0x21   : > { %1210 = vmatpush1.bf16.msra.mxu0 %v1209_v12  ;;  %452 = vmatprep.mubr.f32.mxu0 %v1334_v7  ;;  %v1144_v59 = vld [vmem:[%s1843_s3 + $0x150] sm:$0xff]  ;;  %v1123_v63 = vld [vmem:[%s1843_s3 + $0xd8] sm:$0xff]  ;;  %v1146_v1 = vld [vmem:[%s1843_s3 + $0x160] sm:$0xff] }
  0x22   : > { %1212 = vmatprep.subr.bf16.mxu0 %v1211_v14  ;;  %1085 = vmatmul.mubr.msk.f32.vlgmr.msra.gmra.mrb[0].mxu1 %vm274_vm0, %v250_v21  ;;  %v1287_v61 = vpack.c.bf16 %v1145_v60, %v1144_v59  ;;  %v1122_v62 = vld [vmem:[%s1843_s3 + $0xd0] sm:$0xff]  ;;  %v1147_v2 = vld [vmem:[%s1843_s3 + $0x168] sm:$0xff]  ;;  %v1124_v4 = vld [vmem:[%s1843_s3 + $0xe0] sm:$0xff] }
  0x23   : > { %354 = vmatprep.mubr.f32.mxu1 %v1334_v7  ;;  %1225 = vmatpush1.bf16.msra.mxu1 %v1224_v29  ;;  %v1236_v0 = vpack.c.bf16 %v1123_v63, %v1122_v62  ;;  %v1290_v3 = vpack.c.bf16 %v1147_v2, %v1146_v1  ;;  %v1125_v5 = vld [vmem:[%s1843_s3 + $0xe8] sm:$0xff]  ;;  %v1148_v8 = vld [vmem:[%s1843_s3 + $0x170] sm:$0xff]  ;;  %v1149_v9 = vld [vmem:[%s1843_s3 + $0x178] sm:$0xff] }
  0x24   : > { %1090 = vmatmul.mubr.msk.f32.gmra.mrb[4].mxu0 %vm274_vm0, %v229_v23  ;;  %1226 = vmatprep.subr.bf16.mxu1 %v1335_v28  ;;  %v1239_v6 = vpack.c.bf16 %v1125_v5, %v1124_v4  ;;  %v1293_v10 = vpack.c.bf16 %v1149_v9, %v1148_v8  ;;  %v1126_v11 = vld [vmem:[%s1843_s3 + $0xf0] sm:$0xff]  ;;  %v1127_v12 = vld [vmem:[%s1843_s3 + $0xf8] sm:$0xff]  ;;  %v1150_v14 = vld [vmem:[%s1843_s3 + $0x180] sm:$0xff] }
  0x25   : > { %1214 = vmatpush1.bf16.msra.mxu0 %v1213_v22  ;;  %556 = vmatprep.mubr.f32.mxu0 %v1334_v7  ;;  %v1242_v13 = vpack.c.bf16 %v1127_v12, %v1126_v11  ;;  %v1151_v15 = vld [vmem:[%s1843_s3 + $0x188] sm:$0xff]  ;;  %v1128_v17 = vld [vmem:[%s1843_s3 + $0x100] sm:$0xff]  ;;  %v1152_v20 = vld [vmem:[%s1843_s3 + $0x190] sm:$0xff] }
  0x26   : > { %1216 = vmatprep.subr.bf16.mxu0 %v1215_v24  ;;  %1086 = vmatmul.mubr.msk.f32.gmra.mrb[2].mxu1 %vm274_vm0, %v251_v33  ;;  %v1296_v16 = vpack.c.bf16 %v1151_v15, %v1150_v14  ;;  %v1129_v18 = vld [vmem:[%s1843_s3 + $0x108] sm:$0xff]  ;;  %v1153_v21 = vld [vmem:[%s1843_s3 + $0x198] sm:$0xff]  ;;  %v1130_v23 = vld [vmem:[%s1843_s3 + $0x110] sm:$0xff]  ;;  %v584_v33 = vshrl.u32 %v583_v31, 7 }
  0x27   : > { %360 = vmatprep.mubr.f32.mxu1 %v1334_v7  ;;  %1228 = vmatpush1.bf16.msra.mxu1 %v1227_v38  ;;  %v1245_v19 = vpack.c.bf16 %v1129_v18, %v1128_v17  ;;  %v1299_v22 = vpack.c.bf16 %v1153_v21, %v1152_v20  ;;  %v1131_v24 = vld [vmem:[%s1843_s3 + $0x118] sm:$0xff]  ;;  %v1154_v25 = vld [vmem:[%s1843_s3 + $0x1a0] sm:$0xff]  ;;  %v1155_v27 = vld [vmem:[%s1843_s3 + $0x1a8] sm:$0xff] }
  0x28   : > { %1229 = vmatprep.subr.bf16.mxu1 %v1335_v28  ;;  %v1248_v26 = vpack.c.bf16 %v1131_v24, %v1130_v23  ;;  %v1302_v29 = vpack.c.bf16 %v1155_v27, %v1154_v25  ;;  %v585_v36 = vsub.s32 0, %v584_v33  ;;  %v581_v38 = vld [vmem:[%s1842_s2] sm:$0x3]  ;;  %v589_v39 = vsub.s32 1, %v584_v33  ;;  %v631_v23 = vld [vmem:[%s1843_s3 + $0x18] sm:$0xff] }
  0x29   : > { %1218 = vmatpush1.bf16.msra.mxu0 %v1217_v34  ;;  %v628_v9 = vld [vmem:[%s1843_s3] sm:$0xff] }
  0x2a   : > { %1220 = vmatprep.subr.bf16.mxu0 %v1219_v35  ;;  %1087 = vmatmul.mubr.msk.f32.gmra.mrb[4].mxu1 %vm274_vm0, %v252_v41  ;;  %v586_v41 = vrot.slane %v581_v38, %v585_v36  ;;  %v590_v43 = vrot.slane %v581_v38, %v589_v39  ;;  %v632_v36 = vld [vmem:[%s1843_s3 + $0x20] sm:$0xff] }
  0x2b   : > { %1231 = vmatpush1.bf16.msra.mxu1 %v1230_v45 }
  0x2c   : > { %1232 = vmatprep.subr.bf16.mxu1 %v1335_v28 }
  0x2d   : > { %1222 = vmatpush1.bf16.msra.mxu0 %v1221_v42 }
  0x2e   : > { %1277 = vmatprep.subr.bf16.mxu0 %v1335_v28 }
  0x2f   : > { %1234 = vmatpush1.bf16.msra.mxu1 %v1233_v58 }
  0x30   : > { %1111 = vmatmul.mubr.msk.f32.vlgmr.msra.gmra.mrb[0].mxu0 %vm274_vm0, %v459_v46  ;;  %1235 = vmatprep.subr.bf16.mxu1 %v1335_v28 }
  0x31   : > { %562 = vmatprep.mubr.f32.mxu0 %v1334_v7  ;;  %1279 = vmatpush1.bf16.msra.mxu0 %v1278_v47 }
  0x32   : > { %1280 = vmatprep.subr.bf16.mxu0 %v1335_v28 }
  0x33   : > { %1237 = vmatpush1.bf16.msra.mxu1 %v1236_v0 }
  0x34   : > { %1112 = vmatmul.mubr.msk.f32.gmra.mrb[2].mxu0 %vm274_vm0, %v460_v50  ;;  %1238 = vmatprep.subr.bf16.mxu1 %v1335_v28 }
  0x35   : > { %568 = vmatprep.mubr.f32.mxu0 %v1334_v7  ;;  %1282 = vmatpush1.bf16.msra.mxu0 %v1281_v51 }
  0x36   : > { %1283 = vmatprep.subr.bf16.mxu0 %v1335_v28 }
  0x37   : > { %1240 = vmatpush1.bf16.msra.mxu1 %v1239_v6 }
  0x38   : > { %1113 = vmatmul.mubr.msk.f32.gmra.mrb[4].mxu0 %vm274_vm0, %v461_v54  ;;  %1241 = vmatprep.subr.bf16.mxu1 %v1335_v28  ;;  %v641_v54 = vld [vmem:[%s1843_s3 + $0x68] sm:$0xff] }
  0x39   : > { %1285 = vmatpush1.bf16.msra.mxu0 %v1284_v55 }
  0x3a   : > { %1286 = vmatprep.subr.bf16.mxu0 %v1335_v28 }
  0x3b   : > { %1243 = vmatpush1.bf16.msra.mxu1 %v1242_v13 }
  0x3c   : > { %1244 = vmatprep.subr.bf16.mxu1 %v1335_v28 }
  0x3d   : > { %1288 = vmatpush1.bf16.msra.mxu0 %v1287_v61 }
  0x3e   : > { %1289 = vmatprep.subr.bf16.mxu0 %v1335_v28 }
  0x3f   : > { %1246 = vmatpush1.bf16.msra.mxu1 %v1245_v19 }
  0x40   : > { %1247 = vmatprep.subr.bf16.mxu1 %v1335_v28 }
  0x41   : > { %1291 = vmatpush1.bf16.msra.mxu0 %v1290_v3 }
  0x42   : > { %1292 = vmatprep.subr.bf16.mxu0 %v1335_v28 }
  0x43   : > { %1249 = vmatpush1.bf16.msra.mxu1 %v1248_v26 }
  0x44   : > { %1250 = vmatprep.subr.bf16.mxu1 %v1335_v28 }
  0x45   : > { %1294 = vmatpush1.bf16.msra.mxu0 %v1293_v10  ;;  %v629_v10 = vld [vmem:[%s1843_s3 + $0x8] sm:$0xff] }
  0x46   : > { %1295 = vmatprep.subr.bf16.mxu0 %v1335_v28  ;;  %v1251_v18 = vpack.c.bf16 %v629_v10, %v628_v9 }
  0x49   : > { %1297 = vmatpush1.bf16.msra.mxu0 %v1296_v16 }
  0x4a   : > { %1298 = vmatprep.subr.bf16.mxu0 %v1335_v28 }
  0x4d   : > { %1300 = vmatpush1.bf16.msra.mxu0 %v1299_v22  ;;  %v630_v22 = vld [vmem:[%s1843_s3 + $0x10] sm:$0xff] }
  0x4e   : > { %1301 = vmatprep.subr.bf16.mxu0 %v1335_v28  ;;  %v1254_v31 = vpack.c.bf16 %v631_v23, %v630_v22 }
  0x51   : > { %1303 = vmatpush1.bf16.msra.mxu0 %v1302_v29 }
  0xf5   : > { %v350_v30 = vpop.f32.mrb[0].mxu1 }
  0xf6   : > { %v352_v32 = vpop.f32.mrb[1].mxu1 }
  0xf9   : > { %v356_v34 = vpop.f32.mrb[2].mxu1 }
  0xfa   : > { %v358_v35 = vpop.f32.mrb[3].mxu1 }
  0xfd   : > { %v362_v37 = vpop.f32.mrb[4].mxu1 }
  0xfe   : > { %v364_v40 = vpop.f32.mrb[5].mxu1 }
 0x103   : > { %v558_v42 = vpop.f32.mrb[0].mxu0 }
 0x104   : > { %v1304_v44 = vadd.f32 %v558_v42, %v350_v30  ;;  %v560_v45 = vpop.f32.mrb[1].mxu0 }
 0x105   : > { %v1305_v46 = vadd.f32 %v560_v45, %v352_v32 }
 0x106   : > { %v593_v47 = vadd.f32 %v1304_v44, %v586_v41  ;;  %v635_v44 = vld [vmem:[%s1843_s3 + $0x38] sm:$0xff] }
 0x107   : > { %v594_v48 = vadd.f32 %v1305_v46, %v590_v43  ;;  %v564_v49 = vpop.f32.mrb[2].mxu0 }
 0x108   : > { %v599_v50 = vmax.f32 %v593_v47, 0.0  ;;  %v1306_v51 = vadd.f32 %v564_v49, %v356_v34  ;;  %v566_v52 = vpop.f32.mrb[3].mxu0  ;;  %v636_v47 = vld [vmem:[%s1843_s3 + $0x40] sm:$0xff] }
 0x109   : > { %v600_v53 = vmax.f32 %v594_v48, 0.0  ;;  %v1307_v55 = vadd.f32 %v566_v52, %v358_v35  ;;  %v637_v48 = vld [vmem:[%s1843_s3 + $0x48] sm:$0xff] }
 0x10a   : > { %605 = vst [vmem:[#allocation2] sm:$0xff] %v599_v50  ;;  %v595_v56 = vadd.f32 %v1306_v51, %v586_v41  ;;  %v1263_v49 = vpack.c.bf16 %v637_v48, %v636_v47  ;;  %v638_v50 = vld [vmem:[%s1843_s3 + $0x50] sm:$0xff]  ;;  %v639_v51 = vld [vmem:[%s1843_s3 + $0x58] sm:$0xff] }
 0x10b   : > { %607 = vst.msk [vmem:[#allocation2 + $0x8] sm:$0xff] %vm606_vm1, %v600_v53  ;;  %v596_v57 = vadd.f32 %v1307_v55, %v590_v43  ;;  %v570_v58 = vpop.f32.mrb[4].mxu0  ;;  %v1266_v52 = vpack.c.bf16 %v639_v51, %v638_v50  ;;  %v640_v53 = vld [vmem:[%s1843_s3 + $0x60] sm:$0xff] }
 0x10c   : > { %617 = vst.msk [vmem:[#allocation2] ss:$8 sm:$0x3] %vm1728_vm2, %v1334_v7  ;;  %v1736_v59 = vmax.f32 %v595_v56, 0.0  ;;  %v1308_v60 = vadd.f32 %v570_v58, %v362_v37  ;;  %v572_v61 = vpop.f32.mrb[5].mxu0  ;;  %v633_v37 = vld [vmem:[%s1843_s3 + $0x28] sm:$0xff]  ;;  %v1269_v55 = vpack.c.bf16 %v641_v54, %v640_v53 }
 0x10d   : > { %v602_v62 = vmax.f32 %v596_v57, 0.0  ;;  %v1309_v63 = vadd.f32 %v572_v61, %v364_v40  ;;  %v1257_v42 = vpack.c.bf16 %v633_v37, %v632_v36  ;;  %v642_v56 = vld [vmem:[%s1843_s3 + $0x70] sm:$0xff]  ;;  %v643_v57 = vld [vmem:[%s1843_s3 + $0x78] sm:$0xff]  ;;  %v645_v61 = vld [vmem:[%s1843_s3 + $0x88] sm:$0xff] }
 0x10e   : > { %v597_v0 = vadd.f32 %v1308_v60, %v586_v41  ;;  %v677_v17 = vrot.slane %v1736_v59, 1  ;;  %v890_v19 = vrot.slane %v1736_v59, 2  ;;  %v1272_v58 = vpack.c.bf16 %v643_v57, %v642_v56  ;;  %v644_v60 = vld [vmem:[%s1843_s3 + $0x80] sm:$0xff] }
 0x10f   : > { %609 = vst.msk [vmem:[#allocation2 + $0x18] sm:$0xff] %vm606_vm1, %v602_v62  ;;  %v598_v1 = vadd.f32 %v1309_v63, %v590_v43  ;;  %v634_v43 = vld [vmem:[%s1843_s3 + $0x30] sm:$0xff]  ;;  %v1275_v62 = vpack.c.bf16 %v645_v61, %v644_v60 }
 0x110   : > { %v603_v2 = vmax.f32 %v597_v0, 0.0  ;;  %v1260_v45 = vpack.c.bf16 %v635_v44, %v634_v43 }
 0x111   : > { %v604_v3 = vmax.f32 %v598_v1, 0.0  ;;  %v646_v4 = vld [vmem:[#allocation2] sm:$0xfe] }
 0x112   : > { %610 = vst [vmem:[#allocation2 + $0x20] sm:$0x3f] %v603_v2  ;;  %v861_v5 = vld [vmem:[#allocation2] sm:$0xfc]  ;;  %v647_v6 = vld [vmem:[#allocation2 + $0x8] sm:$0xfe] }
 0x113   : > { %612 = vst.msk [vmem:[#allocation2 + $0x28] sm:$0x3f] %vm611_vm3, %v604_v3  ;;  %v862_v8 = vld [vmem:[#allocation2 + $0x8] sm:$0xfc]  ;;  %v676_v12 = vrot.slane %v646_v4, 1  ;;  %v889_v13 = vrot.slane %v861_v5, 2 }
 0x114   : > { %620 = vst.msk [vmem:[#allocation2 + $0x21] ss:$8 sm:$0x3] %vm1728_vm2, %v1334_v7  ;;  %v679_v14 = vrot.slane %v647_v6, 1  ;;  %v892_v7 = vrot.slane %v862_v8, 2  ;;  %v623_v46 = vld [vmem:[#allocation2 + $0x8] sm:$0xff] }
 0x115   : > { %v678_v24 = vsel %vm675_vm4, %v676_v12, %v677_v17  ;;  %v891_v25 = vsel %vm888_vm5, %v889_v13, %v890_v19  ;;  %v622_v63 = vld [vmem:[#allocation2] sm:$0xff] }
 0x116   : > { %v1748_v11 = vld [vmem:[#allocation2 + $0x18] sm:$0xff] }
 0x117   : > { %v680_v15 = vrot.slane %v1748_v11, 1  ;;  %v893_v16 = vrot.slane %v1748_v11, 2 }
 0x119   : > { %v681_v20 = vsel %vm675_vm4, %v679_v14, %v680_v15  ;;  %v894_v21 = vsel %vm888_vm5, %v892_v7, %v893_v16  ;;  %v1159_v7 = vld [vmem:[%s1844_s4] ss:$0 sm:$0xff] }
 0x11a   : > { %1132 = vmatprep.mubr.msk.f32.mxu1 %vm606_vm1, %v681_v20  ;;  %1156 = vmatprep.mubr.msk.f32.mxu0 %vm606_vm1, %v894_v21 }
 0x11b   : > { %760 = vmatmul.mubr.f32.vlgmr.msra.gmra.mrb[6].mxu1 %v678_v24  ;;  %973 = vmatmul.mubr.f32.vlgmr.msra.gmra.mrb[6].mxu0 %v891_v25  ;;  %v649_v26 = vld [vmem:[#allocation2 + $0x28] sm:$0x1f]  ;;  %v648_v29 = vld [vmem:[#allocation2 + $0x20] sm:$0x1f] }
 0x11c   : > { %v864_v27 = vld [vmem:[#allocation2 + $0x28] sm:$0x3f]  ;;  %1252 = vmatpush1.bf16.msra.mxu1 %v1251_v18  ;;  %v684_v30 = vrot.slane %v649_v26, 1  ;;  %v682_v33 = vrot.slane %v648_v29, 1  ;;  %v863_v34 = vld [vmem:[#allocation2 + $0x20] sm:$0x3f] }
 0x11d   : > { %v897_v32 = vrot.slane %v864_v27, 2  ;;  %1253 = vmatprep.subr.bf16.mxu1 %v1335_v28  ;;  %v895_v35 = vrot.slane %v863_v34, 2  ;;  %v627_v0 = vld [vmem:[#allocation2 + $0x28] sm:$0xf]  ;;  %v626_v1 = vld [vmem:[#allocation2 + $0x20] sm:$0xf] }
 0x11e   : > { %v685_v38 = vsel %vm675_vm4, %v680_v15, %v684_v30  ;;  %v683_v40 = vsel %vm675_vm4, %v677_v17, %v682_v33 }
 0x11f   : > { %v898_v39 = vsel %vm888_vm5, %v893_v16, %v897_v32  ;;  %1133 = vmatprep.mubr.msk.f32.mxu1 %vm606_vm1, %v685_v38  ;;  %v896_v41 = vsel %vm888_vm5, %v890_v19, %v895_v35 }
 0x120   : > { %1157 = vmatprep.mubr.msk.f32.mxu0 %vm606_vm1, %v898_v39  ;;  %1255 = vmatpush1.bf16.msra.mxu1 %v1254_v31 }
 0x121   : > { %978 = vmatmul.mubr.f32.gmra.mrb[8].mxu0 %v896_v41  ;;  %765 = vmatmul.mubr.f32.gmra.mrb[8].mxu1 %v683_v40 }
 0x122   : > { %1158 = vmatprep.mubr.msk.f32.mxu0 %vm606_vm1, %v897_v32  ;;  %1134 = vmatprep.mubr.msk.f32.mxu1 %vm606_vm1, %v684_v30 }
 0x123   : > { %1256 = vmatprep.subr.bf16.mxu1 %v1335_v28 }
 0x124   : > { %1258 = vmatpush1.bf16.msra.mxu1 %v1257_v42 }
 0x125   : > { %983 = vmatmul.mubr.f32.gmra.mrb[10].mxu0 %v895_v35  ;;  %770 = vmatmul.mubr.f32.gmra.mrb[10].mxu1 %v682_v33 }
 0x126   : > { %1259 = vmatprep.subr.bf16.mxu1 %v1335_v28  ;;  %1135 = vmatprep.mubr.msk.f32.mxu1 %vm606_vm1, %v623_v46 }
 0x128   : > { %1261 = vmatpush1.bf16.msra.mxu1 %v1260_v45 }
 0x129   : > { %1262 = vmatprep.subr.bf16.mxu1 %v1335_v28 }
 0x12c   : > { %1264 = vmatpush1.bf16.msra.mxu1 %v1263_v49 }
 0x12d   : > { %1265 = vmatprep.subr.bf16.mxu1 %v1335_v28 }
 0x130   : > { %1267 = vmatpush1.bf16.msra.mxu1 %v1266_v52 }
 0x131   : > { %1268 = vmatprep.subr.bf16.mxu1 %v1335_v28 }
 0x134   : > { %1270 = vmatpush1.bf16.msra.mxu1 %v1269_v55 }
 0x135   : > { %1271 = vmatprep.subr.bf16.mxu1 %v1335_v28 }
 0x138   : > { %1273 = vmatpush1.bf16.msra.mxu1 %v1272_v58 }
 0x139   : > { %1274 = vmatprep.subr.bf16.mxu1 %v1335_v28 }
 0x13c   : > { %1276 = vmatpush1.bf16.msra.mxu1 %v1275_v62 }
 0x13f   : > { %847 = vmatmul.mubr.f32.vlgmr.msra.gmra.mrb[12].mxu1 %v622_v63 }
 0x140   : > { %1136 = vmatprep.mubr.msk.f32.mxu1 %vm606_vm1, %v1748_v11 }
 0x143   : > { %852 = vmatmul.mubr.f32.gmra.mrb[14].mxu1 %v1736_v59 }
 0x144   : > { %1137 = vmatprep.mubr.msk.f32.mxu1 %vm606_vm1, %v627_v0 }
 0x147   : > { %857 = vmatmul.mubr.f32.gmra.mrb[16].mxu1 %v626_v1 }
 0x1ee   : > { %v761_v2 = vpop.f32.mrb[6].mxu1  ;;  %v974_v3 = vpop.f32.mrb[6].mxu0 }
 0x1ef   : > { %v763_v4 = vpop.f32.mrb[7].mxu1  ;;  %v976_v5 = vpop.f32.mrb[7].mxu0 }
 0x1f4   : > { %v979_v28 = vpop.f32.mrb[8].mxu0  ;;  %v766_v6 = vpop.f32.mrb[8].mxu1 }
 0x1f5   : > { %v981_v8 = vpop.f32.mrb[9].mxu0  ;;  %v768_v9 = vpop.f32.mrb[9].mxu1 }
 0x1f8   : > { %v984_v10 = vpop.f32.mrb[10].mxu0  ;;  %v771_v12 = vpop.f32.mrb[10].mxu1 }
 0x1f9   : > { %v985_v11 = vpop.f32.mrb[11].mxu0  ;;  %v772_v13 = vpop.f32.mrb[11].mxu1 }
 0x212   : > { %v848_v59 = vpop.f32.mrb[12].mxu1 }
 0x213   : > { %v849_v14 = vadd.f32 %v848_v59, %v761_v2  ;;  %v850_v15 = vpop.f32.mrb[13].mxu1 }
 0x215   : > { %v987_v16 = vadd.f32 %v974_v3, %v849_v14 }
 0x216   : > { %v853_v17 = vpop.f32.mrb[14].mxu1 }
 0x217   : > { %v996_v18 = vadd.f32 %v1159_v7, %v987_v16  ;;  %v854_v19 = vadd.f32 %v853_v17, %v766_v6  ;;  %v855_v20 = vpop.f32.mrb[15].mxu1 }
 0x219   : > { %v998_v21 = vmax.f32 %v996_v18, 0.0  ;;  %v988_v22 = vadd.f32 %v979_v28, %v854_v19 }
 0x21a   : > { %v858_v23 = vpop.f32.mrb[16].mxu1 }
 0x21b   : > { %1000 = vst [vmem:[%s226_s10] sm:$0xff] %v998_v21  ;;  %v997_v24 = vadd.f32 %v1159_v7, %v988_v22  ;;  %v859_v25 = vpop.f32.mrb[17].mxu1 }
 0x21d   : > { %v999_v26 = vmax.f32 %v997_v24, 0.0 }
 0x21f   : > { %1001 = vst [vmem:[%s226_s10 + $0x8] sm:$0xff] %v999_v26 }
 0x220 PF: > { %s15_s18 = sadd.s32 1, %s1332_s18  }
 0x221   : > { %p12_p5 = scmp.ge.s32.totalorder %s15_s18, 4  }
 0x223   :  { %14 = sbr.rel (!%p12_p5) target bundleno = 1 (0x1), region = 75 }

</bundles_post_ra>
